<compile_context>
chip_gen: v6e
topology: v6e:2x2x1
jax: 0.10.0
libtpu: 0.0.40
codegen_flags: <defaults>
</compile_context>

<pallas_src>
import functools

import jax
import jax.numpy as jnp
from jax.experimental import pallas as pl
from jax.experimental.pallas import tpu as pltpu


def _round_up(x, m):
    return -(-x // m) * m


def _label_smoothing_kernel(pred_ref, tgt_ref, out_ref, *,
                            confidence, smooth_val, n_rows):
    """One tile of rows: per-row smoothed cross-entropy (masked past n_rows)."""
    x = pred_ref[...]                                   # (TR, C) native dtype
    tr, _ = x.shape

    # Row max in the native dtype; shifted logits cast to f32 in one expression
    # so only one (TR, C) f32 intermediate is live at a time.
    m = jnp.max(x, axis=-1, keepdims=True)              # (TR, 1)
    xs = (x - m).astype(jnp.float32)                    # (TR, C) f32

    # log(sum_c exp(x_c - m))  ==  lse - m
    log_z = jnp.log(jnp.sum(jnp.exp(xs), axis=-1, keepdims=True))   # (TR, 1)

    # Single fused weighted reduction: sum_c w_c * (x_c - m), with sum_c w_c == 1.
    tgt = tgt_ref[...]                                   # (TR, 1) int32
    col = jax.lax.broadcasted_iota(jnp.int32, xs.shape, 1)
    w = jnp.where(col == tgt, jnp.float32(confidence), jnp.float32(smooth_val))
    wsum = jnp.sum(w * xs, axis=-1, keepdims=True)       # (TR, 1)

    row_loss = log_z - wsum                              # (TR, 1)

    # Mask rows past the true batch size: the trailing partial block reads
    # unspecified data which must not leak into the output.
    row_idx = pl.program_id(0) * tr + jax.lax.broadcasted_iota(
        jnp.int32, (tr, 1), 0)
    out_ref[...] = jnp.where(row_idx < n_rows, row_loss, 0.0)


def _vmem_capacity_bytes():
    try:
        return int(pltpu.get_tpu_info().vmem_capacity_bytes)
    except Exception:
        return 128 << 20


def _choose_tiling(n, c, itemsize):
    """Generation-aware (tile_rows, vmem_limit_bytes) selection."""
    cap = _vmem_capacity_bytes()
    small_vmem = cap <= (64 << 20)                # v7x TensorCore
    target_block_bytes = (2 << 20) if small_vmem else (8 << 20)
    vmem_limit = max(16 << 20, min(cap // 2, 64 << 20))

    c_pad = _round_up(c, 128)                     # lane padding in VMEM
    # Per-row VMEM cost: double-buffered native-dtype input block plus ~2 live
    # f32 (TR, C) intermediates inside the kernel body.
    bytes_per_row = c_pad * (2 * itemsize + 2 * 4)
    tr = max(8, (target_block_bytes // bytes_per_row) // 8 * 8)

    # Keep several parallel grid steps so both v7x TensorCores get work.
    min_tiles = 4 if n >= 32 else max(1, n // 8)
    tr = min(tr, max(8, _round_up(-(-n // min_tiles), 8)))
    tr = min(tr, _round_up(max(n, 1), 8))

    # Balance tiles so the ragged tail stays small.
    num_tiles = max(1, -(-n // tr))
    tr = max(8, _round_up(-(-n // num_tiles), 8))
    return tr, int(vmem_limit)


def label_smoothing_loss(pred, target, *, classes, smoothing=0.2,
                         tile_rows=None):
    """Pallas implementation of LabelSmoothingLoss.forward (mean loss)."""
    n, c = pred.shape
    assert c == classes
    assert classes > 1, "smoothing/(classes-1) is undefined for classes == 1"
    confidence = 1.0 - smoothing
    smooth_val = smoothing / (classes - 1)

    itemsize = jnp.dtype(pred.dtype).itemsize
    auto_tr, vmem_limit = _choose_tiling(n, c, itemsize)
    if tile_rows is None:
        tile_rows = auto_tr
    tile_rows = max(8, (tile_rows // 8) * 8)
    num_tiles = pl.cdiv(n, tile_rows)

    target2d = target.astype(jnp.int32).reshape(n, 1)

    kernel = functools.partial(
        _label_smoothing_kernel,
        confidence=confidence,
        smooth_val=smooth_val,
        n_rows=n,
    )

    row_loss = pl.pallas_call(
        kernel,
        out_shape=jax.ShapeDtypeStruct((n, 1), jnp.float32),
        grid_spec=pltpu.PrefetchScalarGridSpec(
            num_scalar_prefetch=0,
            grid=(num_tiles,),
            in_specs=[
                pl.BlockSpec((tile_rows, c), lambda i: (i, 0)),
                pl.BlockSpec((tile_rows, 1), lambda i: (i, 0)),
            ],
            out_specs=pl.BlockSpec((tile_rows, 1), lambda i: (i, 0)),
        ),
        compiler_params=pltpu.CompilerParams(
            dimension_semantics=("parallel",),
            vmem_limit_bytes=vmem_limit),
    )(pred, target2d)

    # Final mean over the real rows (padded rows were zeroed in-kernel and the
    # output has exactly n rows), done in plain JAX.
    return jnp.sum(row_loss[:, 0]) / jnp.float32(n)


def _reference(pred, target, classes, smoothing=0.2):
    confidence = 1.0 - smoothing
    logp = jax.nn.log_softmax(pred.astype(jnp.float32), axis=-1)
    true_dist = jnp.full_like(logp, smoothing / (classes - 1))
    true_dist = true_dist.at[jnp.arange(pred.shape[0]), target].set(confidence)
    return jnp.mean(jnp.sum(-true_dist * logp, axis=-1))


if __name__ == "__main__":
    key = jax.random.PRNGKey(0)
    k_pred, k_tgt, k_pred2, k_tgt2 = jax.random.split(key, 4)

    smoothing = 0.2

    # Case 1: small, tile-aligned batch (matches the module's typical use).
    N, C = 16, 10
    pred = jax.random.normal(k_pred, (N, C), dtype=jnp.float32)
    target = jax.random.randint(k_tgt, (N,), 0, C, dtype=jnp.int32)
    loss = label_smoothing_loss(pred, target, classes=C, smoothing=smoothing)
    loss = jax.block_until_ready(loss)
    ref = _reference(pred, target, C, smoothing)
    assert jnp.allclose(loss, ref, rtol=1e-5, atol=1e-5), (loss, ref)

    # Case 2: ragged batch size (exercises the partial trailing block + mask).
    N2, C2 = 37, 21
    pred2 = jax.random.normal(k_pred2, (N2, C2), dtype=jnp.float32)
    target2 = jax.random.randint(k_tgt2, (N2,), 0, C2, dtype=jnp.int32)
    loss2 = label_smoothing_loss(pred2, target2, classes=C2,
                                 smoothing=smoothing)
    loss2 = jax.block_until_ready(loss2)
    ref2 = _reference(pred2, target2, C2, smoothing)
    assert jnp.allclose(loss2, ref2, rtol=1e-5, atol=1e-5), (loss2, ref2)

    print("KERNEL_OK")
</pallas_src>

<mosaic_0001>
module attributes {stable_mosaic.version = 11 : i64} {
  func.func @_label_smoothing_kernel(%arg0: i32, %arg1: memref<8x10xf32, #tpu.memory_space<vmem>>, %arg2: memref<8x1xi32, #tpu.memory_space<vmem>>, %arg3: memref<8x1xf32, #tpu.memory_space<vmem>>) attributes {dimension_semantics = [#tpu.dimension_semantics<parallel>], iteration_bounds = array<i64: 2>, scalar_prefetch = 0 : i64, scratch_operands = 0 : i64, tpu.core_type = #tpu.core_type<tc>, window_params = [{transform_indices = @transform_0, window_bounds = array<i64: 8, 10>}, {transform_indices = @transform_1, window_bounds = array<i64: 8, 1>}, {transform_indices = @transform_2, window_bounds = array<i64: 8, 1>}]} {
    %c0 = arith.constant 0 : index
    %c0_0 = arith.constant 0 : index
    %0 = vector.load %arg1[%c0, %c0_0] : memref<8x10xf32, #tpu.memory_space<vmem>>, vector<8x10xf32>
    %cst = arith.constant dense<0xFF800000> : vector<8xf32>
    %1 = vector.multi_reduction <maximumf>, %0, %cst [1] : vector<8x10xf32> to vector<8xf32>
    %2 = vector.shape_cast %1 : vector<8xf32> to vector<8x1xf32>
    %3 = vector.broadcast %2 : vector<8x1xf32> to vector<8x10xf32>
    %4 = arith.subf %0, %3 : vector<8x10xf32>
    %5 = math.exp %4 : vector<8x10xf32>
    %cst_1 = arith.constant dense<0.000000e+00> : vector<8xf32>
    %6 = vector.multi_reduction <add>, %5, %cst_1 [1] : vector<8x10xf32> to vector<8xf32>
    %7 = vector.shape_cast %6 : vector<8xf32> to vector<8x1xf32>
    %8 = math.log %7 : vector<8x1xf32>
    %c0_2 = arith.constant 0 : index
    %c0_3 = arith.constant 0 : index
    %9 = vector.load %arg2[%c0_2, %c0_3] : memref<8x1xi32, #tpu.memory_space<vmem>>, vector<8x1xi32>
    %10 = tpu.iota {dimensions = array<i32: 1>} : vector<8x10xi32>
    %11 = vector.broadcast %9 : vector<8x1xi32> to vector<8x10xi32>
    %12 = arith.cmpi eq, %10, %11 : vector<8x10xi32>
    %cst_4 = arith.constant 8.000000e-01 : f32
    %cst_5 = arith.constant 0.0222222228 : f32
    %13 = vector.broadcast %cst_4 : f32 to vector<8x10xf32>
    %14 = vector.broadcast %cst_5 : f32 to vector<8x10xf32>
    %15 = arith.select %12, %13, %14 : vector<8x10xi1>, vector<8x10xf32>
    %16 = arith.mulf %15, %4 : vector<8x10xf32>
    %cst_6 = arith.constant dense<0.000000e+00> : vector<8xf32>
    %17 = vector.multi_reduction <add>, %16, %cst_6 [1] : vector<8x10xf32> to vector<8xf32>
    %18 = vector.shape_cast %17 : vector<8xf32> to vector<8x1xf32>
    %19 = arith.subf %8, %18 : vector<8x1xf32>
    %c8_i32 = arith.constant 8 : i32
    %20 = arith.muli %arg0, %c8_i32 : i32
    %21 = tpu.iota {dimensions = array<i32: 0>} : vector<8x1xi32>
    %22 = vector.broadcast %20 : i32 to vector<8x1xi32>
    %23 = arith.addi %22, %21 : vector<8x1xi32>
    %c16_i32 = arith.constant 16 : i32
    %24 = vector.broadcast %c16_i32 : i32 to vector<8x1xi32>
    %25 = arith.cmpi slt, %23, %24 : vector<8x1xi32>
    %cst_7 = arith.constant 0.000000e+00 : f32
    %26 = vector.broadcast %cst_7 : f32 to vector<8x1xf32>
    %27 = arith.select %25, %19, %26 : vector<8x1xi1>, vector<8x1xf32>
    %c0_8 = arith.constant 0 : index
    %c0_9 = arith.constant 0 : index
    %28 = vector.load %arg3[%c0_8, %c0_9] : memref<8x1xf32, #tpu.memory_space<vmem>>, vector<8x1xf32>
    tpu.vector_store %arg3[%c0_8, %c0_9], %27 {strides = array<i32>} : memref<8x1xf32, #tpu.memory_space<vmem>>, vector<8x1xf32>,
    return
  }
  func.func @transform_0(%arg0: i32) -> (i32, i32) {
    %c0_i32 = arith.constant 0 : i32
    %c0_i32_0 = arith.constant 0 : i32
    return %arg0, %c0_i32 : i32, i32
  }
  func.func @transform_1(%arg0: i32) -> (i32, i32) {
    %c0_i32 = arith.constant 0 : i32
    %c0_i32_0 = arith.constant 0 : i32
    return %arg0, %c0_i32 : i32, i32
  }
  func.func @transform_2(%arg0: i32) -> (i32, i32) {
    %c0_i32 = arith.constant 0 : i32
    %c0_i32_0 = arith.constant 0 : i32
    return %arg0, %c0_i32 : i32, i32
  }
}

</mosaic_0001>

<bundles_post_ra>
// kernel: tpu_custom_call.1
= control target key start
LH: loop header
LB: loop body
LE: loop exit
PB: predicated region body
PF: predicated region fallthrough
CT: control target
= control target key end

     0   :  { %s307_s9 = smov 0   ;;  %s340_s0 = inlined_call_operand.vmem [shape: f32[16,10], index: 0, kind: input, shape index: {}]   ;;  %s341_s1 = inlined_call_operand.vmem [shape: s32[16,1], index: 1, kind: input, shape index: {}]   ;;  %s342_s2 = inlined_call_operand.vmem [shape: f32[16,1], index: 2, kind: output, shape index: {}]  }
   0x1 LB: > { %s313_s10 = sadd.s32 4294967295, %s288_s9   ;;  %p260_p0 = scmp.ge.s32.totalorder %s288_s9, 1  ;;  %s288_s9 = sphi %s307_s9, %s12_s9  }
   0x2   : > { %p120_p1 = scmp.lt.s32.totalorder %s288_s9, 3 }
   0x4   : > { %p121_p2 = pnand %p260_p0, %p120_p1 }
   0x5   : > { %p144_p3 = scmp.lt.s32.totalorder (!%p121_p2), %s313_s10, 1  ;;  %s264_s19 = sshll.u32 (!%p121_p2), %s313_s10, 3 }
   0x6   : > { %124 = sbr.rel (%p121_p2) target bundleno = 332 (0x14c), region = 28 }
   0xb   : > { %v290_v0 = vmov 0   ;;  %s145_s11 = scalar_select %p144_p3, %s313_s10, 1  ;;  %vm157_vm0 = vcmask 80896   ;;  %v170_v7 = vlaneseq  ;;  %v291_v10 = vmov 0.022222223  }
   0xc   : > { %277 = vset.pattern.permute.xlu0 %v290_v0  ;;  %v185_v18 = vstv %s264_s19  ;;  %vm189_vm3 = vcmask 7168  }
   0xd   : > { %s319_s12 = sshll.u32 %s145_s11, 3  ;;  %v171_v8 = vand.u32 127, %v170_v7  ;;  %v184_v17 = vshrl.u32 %v170_v7, 7 }
   0xe   : > { %s147_s15 = scalar_lea.vmem %s340_s0, %s319_s12  ;;  %s151_s18 = scalar_lea.vmem %s341_s1, %s319_s12 }
   0xf   : > { %v156_v1 = vld [vmem:[%s147_s15] sm:$0xff]  ;;  %v186_v19 = vadd.s32 %v185_v18, %v184_v17  ;;  %s155_s22 = scalar_lea.vmem %s342_s2, %s319_s12 }
  0x10   : > { %v158_v2 = vsel %vm157_vm0, %v156_v1, -inf  ;;  %v169_v3 = vld [vmem:[%s151_s18] sm:$0xff] }
  0x11   : > { %159 = vmax.xlane.f32.xlu0 %v158_v2  ;;  %vm187_vm2 = vcmp.lt.s32.totalorder %v186_v19, 16 }
  0x27   : > { %173 = vperm.xlu0 %277, %v169_v3  }
  0x9a   : > { %v160_v4 = vpop.xlane.xlu0 %159 }
  0x9b   : > { %v161_v5 = vsub.f32 %v156_v1, %v160_v4 }
  0x9d   : > { %v162_v6 = vmul.f32 1.442695, %v161_v5 }
  0x9f   : > { %278 = vpow2.f32 %v162_v6 }
  0xa2   : > { %v174_v9 = vpop.permute.xlu0 %173 }
  0xa3   : > { %vm175_vm1 = vcmp.eq.s32.totalorder %v171_v8, %v174_v9 }
  0xa4   : > { %v176_v11 = vsel %vm175_vm1, 0.8, %v291_v10 }
  0xa5   : > { %v177_v14 = vmul.f32 %v176_v11, %v161_v5 }
  0xa7   : > { %v178_v15 = vsel %vm157_vm0, %v177_v14, 0.0 }
  0xac   : > { %v279_v12 = vpop.eup %278 }
  0xad   : > { %v164_v13 = vsel %vm157_vm0, %v279_v12, 0.0 }
  0xae   : > { %165 = vadd.xlane.f32.xlu1 %v164_v13 }
  0xb2   : > { %179 = vadd.xlane.f32.xlu1 %v178_v15 }
 0x137   : > { %v166_v16 = vpop.xlane.xlu1 %165 }
 0x138   : > { %280 = vlog2.f32 %v166_v16 }
 0x13b   : > { %v180_v22 = vpop.xlane.xlu1 %179 }
 0x145   : > { %v281_v20 = vpop.eup %280 }
 0x146   : > { %v168_v21 = vmul.f32 0.6931472, %v281_v20 }
 0x148   : > { %v181_v23 = vsub.f32 %v168_v21, %v180_v22 }
 0x14a   : > { %v188_v24 = vsel %vm187_vm2, %v181_v23, 0.0 }
 0x14b   : > { %190 = vst.msk [vmem:[%s155_s22] sm:$0xff] %vm189_vm3, %v188_v24 }
 0x14c PF: > { %s12_s9 = sadd.s32 1, %s288_s9  }
 0x14d   : > { %p9_p4 = scmp.ge.s32.totalorder %s12_s9, 4  }
 0x14f   :  { %11 = sbr.rel (!%p9_p4) target bundleno = 1 (0x1), region = 61 }

</bundles_post_ra>
